<compile_context>
chip_gen: v7x
topology: tpu7x:2x2x1
jax: 0.10.0
libtpu: 0.0.40
codegen_flags: <defaults>
</compile_context>

<pallas_src>
import jax
import jax.numpy as jnp
from jax.experimental import pallas as pl
from jax.experimental.pallas import tpu as pltpu


def _sigmoid(v):
    # sigmoid(v) == 0.5 * tanh(0.5 * v) + 0.5 ; tanh goes to the (otherwise
    # idle) EUP slot, keeping the VPU free for the bias add and casts.
    return 0.5 * jnp.tanh(0.5 * v) + 0.5


def sae_kernel(x_ref, w1_ref, b1_ref, w2_ref, b2_ref, out_ref, a2_ref):
    # --- hot path: two matmuls + bias + sigmoid, all in VMEM ---
    x = x_ref[...]                                                # (tb, d_in)
    h = jnp.dot(x, w1_ref[...],
                preferred_element_type=jnp.float32) + b1_ref[...]
    a2 = _sigmoid(h)                                              # (tb, hidden)
    a2_ref[...] = a2.astype(a2_ref.dtype)

    y = jnp.dot(a2.astype(w2_ref.dtype), w2_ref[...],
                preferred_element_type=jnp.float32) + b2_ref[...]
    out_ref[...] = _sigmoid(y).astype(out_ref.dtype)              # (tb, d_in)


def _round_up(n, m):
    return ((n + m - 1) // m) * m


def _pick_tb(B, d_in, hidden, vmem_budget=48 * 1024 * 1024):
    """Pick a batch tile: multiple of 8 sublanes, ~8 grid steps, fits VMEM."""
    weight_bytes = (2 * d_in * hidden + d_in + hidden) * 4   # single-buffered
    per_row = 2 * (2 * d_in + hidden) * 4                    # x/out/a2, 2 bufs
    avail = max(vmem_budget - weight_bytes, per_row * 8)
    tb_cap = max(8, (avail // per_row) // 8 * 8)
    tb = _round_up(max(1, B // 8), 8)       # aim for ~8 grid steps
    tb = min(tb, 1024, tb_cap, _round_up(B, 8))
    return max(tb, 8)


def _build_call(B, d_in, hidden, tb, x_dtype, resident_kwargs,
                vmem_limit, cost_estimate):
    return pl.pallas_call(
        sae_kernel,
        out_shape=(
            jax.ShapeDtypeStruct((B, d_in), x_dtype),
            jax.ShapeDtypeStruct((B, hidden), x_dtype),
        ),
        grid_spec=pltpu.PrefetchScalarGridSpec(
            num_scalar_prefetch=0,
            grid=(pl.cdiv(B, tb),),
            in_specs=[
                pl.BlockSpec((tb, d_in), lambda i: (i, 0)),        # x tile
                pl.BlockSpec((d_in, hidden), lambda i: (0, 0),
                             **resident_kwargs),                   # W1t
                pl.BlockSpec((1, hidden), lambda i: (0, 0),
                             **resident_kwargs),                   # b1
                pl.BlockSpec((hidden, d_in), lambda i: (0, 0),
                             **resident_kwargs),                   # W2t
                pl.BlockSpec((1, d_in), lambda i: (0, 0),
                             **resident_kwargs),                   # b2
            ],
            out_specs=[
                pl.BlockSpec((tb, d_in), lambda i: (i, 0)),        # sigmoid(l2)
                pl.BlockSpec((tb, hidden), lambda i: (i, 0)),      # a2
            ],
        ),
        compiler_params=pltpu.CompilerParams(
            dimension_semantics=("parallel",),
            vmem_limit_bytes=vmem_limit,
        ),
        cost_estimate=cost_estimate,
    )


def autoencoder_forward(x, w1t, b1, w2t, b2, *, tb=None):
    B, d_in = x.shape
    hidden = w1t.shape[1]
    if tb is None:
        tb = _pick_tb(B, d_in, hidden)
    tb = min(tb, _round_up(B, 8))

    # Explicit scoped-VMEM budget: single-buffered weights/biases plus
    # double-buffered x / out / a2 tiles, with 2x headroom; clamp to the
    # 64 MiB physical VMEM of v7x (defaults are 16/32 MiB -- too small).
    weight_bytes = (2 * d_in * hidden + d_in + hidden) * 4
    act_bytes = 2 * tb * (2 * d_in + hidden) * 4
    vmem_limit = int(min(max(2 * (weight_bytes + act_bytes), 32 * 1024 * 1024),
                         64 * 1024 * 1024))

    cost_estimate = pl.CostEstimate(
        flops=2 * 2 * B * d_in * hidden,                       # two matmuls
        transcendentals=B * (hidden + d_in),                   # one tanh each
        bytes_accessed=4 * (2 * B * d_in + B * hidden
                            + 2 * d_in * hidden + d_in + hidden),
    )

    # Resident operands (constant index_map) only need one buffer.
    resident = {}
    if hasattr(pl, "Buffered"):
        resident = {"pipeline_mode": pl.Buffered(1)}

    try:
        fwd = _build_call(B, d_in, hidden, tb, x.dtype, resident,
                          vmem_limit, cost_estimate)
        out, a2 = fwd(x, w1t, b1, w2t, b2)
    except Exception:
        # Fallback: some JAX builds may not accept pipeline_mode on the
        # top-level pallas_call pipeline; default double-buffering is correct,
        # just slightly more VMEM-hungry.
        fwd = _build_call(B, d_in, hidden, tb, x.dtype, {},
                          vmem_limit, cost_estimate)
        out, a2 = fwd(x, w1t, b1, w2t, b2)
    return out, a2


def autoencoder_ref(x, w1t, b1, w2t, b2):
    a2 = jax.nn.sigmoid(x @ w1t + b1)
    out = jax.nn.sigmoid(a2 @ w2t + b2)
    return out, a2


if __name__ == "__main__":
    # Small demo shapes consistent with the module (B gives 8 grid steps of
    # tb=8). Production SAE shapes should pad d_in/hidden to multiples of 128.
    B, d_in, hidden = 64, 16, 32

    key = jax.random.PRNGKey(0)
    kx, kw1, kb1, kw2, kb2 = jax.random.split(key, 5)

    x = jax.random.normal(kx, (B, d_in), dtype=jnp.float32)

    # Deterministic parameter init (PyTorch-style uniform(-1/sqrt(fan_in), +)).
    bound1 = 1.0 / jnp.sqrt(d_in)
    bound2 = 1.0 / jnp.sqrt(hidden)
    w1t = jax.random.uniform(kw1, (d_in, hidden), jnp.float32, -bound1, bound1)
    b1 = jax.random.uniform(kb1, (1, hidden), jnp.float32, -bound1, bound1)
    w2t = jax.random.uniform(kw2, (hidden, d_in), jnp.float32, -bound2, bound2)
    b2 = jax.random.uniform(kb2, (1, d_in), jnp.float32, -bound2, bound2)

    out, a2 = autoencoder_forward(x, w1t, b1, w2t, b2)
    jax.block_until_ready((out, a2))

    out_ref, a2_ref = autoencoder_ref(x, w1t, b1, w2t, b2)
    assert out.shape == (B, d_in) and a2.shape == (B, hidden)
    assert jnp.allclose(out, out_ref, atol=1e-5, rtol=1e-5)
    assert jnp.allclose(a2, a2_ref, atol=1e-5, rtol=1e-5)

    print("KERNEL_OK")
</pallas_src>

<mosaic_0001>
module attributes {stable_mosaic.version = 11 : i64} {
  func.func @sae_kernel(%arg0: i32, %arg1: memref<8x16xf32, #tpu.memory_space<vmem>>, %arg2: memref<16x32xf32, #tpu.memory_space<vmem>>, %arg3: memref<1x32xf32, #tpu.memory_space<vmem>>, %arg4: memref<32x16xf32, #tpu.memory_space<vmem>>, %arg5: memref<1x16xf32, #tpu.memory_space<vmem>>, %arg6: memref<8x16xf32, #tpu.memory_space<vmem>>, %arg7: memref<8x32xf32, #tpu.memory_space<vmem>>) attributes {dimension_semantics = [#tpu.dimension_semantics<parallel>], iteration_bounds = array<i64: 8>, scalar_prefetch = 0 : i64, scratch_operands = 0 : i64, tpu.core_type = #tpu.core_type<tc>, window_params = [{transform_indices = @transform_0, window_bounds = array<i64: 8, 16>}, {pipeline_mode = #tpu.pipeline_mode<synchronous>, transform_indices = @transform_1, window_bounds = array<i64: 16, 32>}, {pipeline_mode = #tpu.pipeline_mode<synchronous>, transform_indices = @transform_2, window_bounds = array<i64: 1, 32>}, {pipeline_mode = #tpu.pipeline_mode<synchronous>, transform_indices = @transform_3, window_bounds = array<i64: 32, 16>}, {pipeline_mode = #tpu.pipeline_mode<synchronous>, transform_indices = @transform_4, window_bounds = array<i64: 1, 16>}, {transform_indices = @transform_5, window_bounds = array<i64: 8, 16>}, {transform_indices = @transform_6, window_bounds = array<i64: 8, 32>}]} {
    %c0 = arith.constant 0 : index
    %c0_0 = arith.constant 0 : index
    %0 = vector.load %arg1[%c0, %c0_0] : memref<8x16xf32, #tpu.memory_space<vmem>>, vector<8x16xf32>
    %c0_1 = arith.constant 0 : index
    %c0_2 = arith.constant 0 : index
    %1 = vector.load %arg2[%c0_1, %c0_2] : memref<16x32xf32, #tpu.memory_space<vmem>>, vector<16x32xf32>
    %cst = arith.constant dense<0.000000e+00> : vector<8x32xf32>
    %2 = tpu.matmul %0, %1, %cst {dimension_numbers = #tpu.dot_dimension_numbers<[1], [0], [0], [1], [0, 0, 1, 1], [], []>} : vector<8x16xf32>, vector<16x32xf32>, vector<8x32xf32> -> vector<8x32xf32>
    %c0_3 = arith.constant 0 : index
    %c0_4 = arith.constant 0 : index
    %3 = vector.load %arg3[%c0_3, %c0_4] : memref<1x32xf32, #tpu.memory_space<vmem>>, vector<1x32xf32>
    %4 = vector.broadcast %3 : vector<1x32xf32> to vector<8x32xf32>
    %5 = arith.addf %2, %4 : vector<8x32xf32>
    %cst_5 = arith.constant 5.000000e-01 : f32
    %6 = vector.broadcast %cst_5 : f32 to vector<8x32xf32>
    %7 = arith.mulf %6, %5 : vector<8x32xf32>
    %8 = math.tanh %7 : vector<8x32xf32>
    %cst_6 = arith.constant 5.000000e-01 : f32
    %9 = vector.broadcast %cst_6 : f32 to vector<8x32xf32>
    %10 = arith.mulf %9, %8 : vector<8x32xf32>
    %cst_7 = arith.constant 5.000000e-01 : f32
    %11 = vector.broadcast %cst_7 : f32 to vector<8x32xf32>
    %12 = arith.addf %10, %11 : vector<8x32xf32>
    %c0_8 = arith.constant 0 : index
    %c0_9 = arith.constant 0 : index
    %13 = vector.load %arg7[%c0_8, %c0_9] : memref<8x32xf32, #tpu.memory_space<vmem>>, vector<8x32xf32>
    tpu.vector_store %arg7[%c0_8, %c0_9], %12 {strides = array<i32>} : memref<8x32xf32, #tpu.memory_space<vmem>>, vector<8x32xf32>,
    %c0_10 = arith.constant 0 : index
    %c0_11 = arith.constant 0 : index
    %14 = vector.load %arg4[%c0_10, %c0_11] : memref<32x16xf32, #tpu.memory_space<vmem>>, vector<32x16xf32>
    %cst_12 = arith.constant dense<0.000000e+00> : vector<8x16xf32>
    %15 = tpu.matmul %12, %14, %cst_12 {dimension_numbers = #tpu.dot_dimension_numbers<[1], [0], [0], [1], [0, 0, 1, 1], [], []>} : vector<8x32xf32>, vector<32x16xf32>, vector<8x16xf32> -> vector<8x16xf32>
    %c0_13 = arith.constant 0 : index
    %c0_14 = arith.constant 0 : index
    %16 = vector.load %arg5[%c0_13, %c0_14] : memref<1x16xf32, #tpu.memory_space<vmem>>, vector<1x16xf32>
    %17 = vector.broadcast %16 : vector<1x16xf32> to vector<8x16xf32>
    %18 = arith.addf %15, %17 : vector<8x16xf32>
    %cst_15 = arith.constant 5.000000e-01 : f32
    %19 = vector.broadcast %cst_15 : f32 to vector<8x16xf32>
    %20 = arith.mulf %19, %18 : vector<8x16xf32>
    %21 = math.tanh %20 : vector<8x16xf32>
    %cst_16 = arith.constant 5.000000e-01 : f32
    %22 = vector.broadcast %cst_16 : f32 to vector<8x16xf32>
    %23 = arith.mulf %22, %21 : vector<8x16xf32>
    %cst_17 = arith.constant 5.000000e-01 : f32
    %24 = vector.broadcast %cst_17 : f32 to vector<8x16xf32>
    %25 = arith.addf %23, %24 : vector<8x16xf32>
    %c0_18 = arith.constant 0 : index
    %c0_19 = arith.constant 0 : index
    %26 = vector.load %arg6[%c0_18, %c0_19] : memref<8x16xf32, #tpu.memory_space<vmem>>, vector<8x16xf32>
    tpu.vector_store %arg6[%c0_18, %c0_19], %25 {strides = array<i32>} : memref<8x16xf32, #tpu.memory_space<vmem>>, vector<8x16xf32>,
    return
  }
  func.func @transform_0(%arg0: i32) -> (i32, i32) {
    %c0_i32 = arith.constant 0 : i32
    %c0_i32_0 = arith.constant 0 : i32
    return %arg0, %c0_i32 : i32, i32
  }
  func.func @transform_1(%arg0: i32) -> (i32, i32) {
    %c0_i32 = arith.constant 0 : i32
    %c0_i32_0 = arith.constant 0 : i32
    %c0_i32_1 = arith.constant 0 : i32
    return %c0_i32, %c0_i32_0 : i32, i32
  }
  func.func @transform_2(%arg0: i32) -> (i32, i32) {
    %c0_i32 = arith.constant 0 : i32
    %c0_i32_0 = arith.constant 0 : i32
    %c0_i32_1 = arith.constant 0 : i32
    return %c0_i32, %c0_i32_0 : i32, i32
  }
  func.func @transform_3(%arg0: i32) -> (i32, i32) {
    %c0_i32 = arith.constant 0 : i32
    %c0_i32_0 = arith.constant 0 : i32
    %c0_i32_1 = arith.constant 0 : i32
    return %c0_i32, %c0_i32_0 : i32, i32
  }
  func.func @transform_4(%arg0: i32) -> (i32, i32) {
    %c0_i32 = arith.constant 0 : i32
    %c0_i32_0 = arith.constant 0 : i32
    %c0_i32_1 = arith.constant 0 : i32
    return %c0_i32, %c0_i32_0 : i32, i32
  }
  func.func @transform_5(%arg0: i32) -> (i32, i32) {
    %c0_i32 = arith.constant 0 : i32
    %c0_i32_0 = arith.constant 0 : i32
    return %arg0, %c0_i32 : i32, i32
  }
  func.func @transform_6(%arg0: i32) -> (i32, i32) {
    %c0_i32 = arith.constant 0 : i32
    %c0_i32_0 = arith.constant 0 : i32
    return %arg0, %c0_i32 : i32, i32
  }
}

module attributes {stable_mosaic.version = 11 : i64} {
  func.func @sae_kernel(%arg0: i32, %arg1: memref<8x16xf32, #tpu.memory_space<vmem>>, %arg2: memref<16x32xf32, #tpu.memory_space<vmem>>, %arg3: memref<1x32xf32, #tpu.memory_space<vmem>>, %arg4: memref<32x16xf32, #tpu.memory_space<vmem>>, %arg5: memref<1x16xf32, #tpu.memory_space<vmem>>, %arg6: memref<8x16xf32, #tpu.memory_space<vmem>>, %arg7: memref<8x32xf32, #tpu.memory_space<vmem>>) attributes {dimension_semantics = [#tpu.dimension_semantics<parallel>], iteration_bounds = array<i64: 8>, scalar_prefetch = 0 : i64, scratch_operands = 0 : i64, tpu.core_type = #tpu.core_type<tc>, window_params = [{transform_indices = @transform_0, window_bounds = array<i64: 8, 16>}, {pipeline_mode = #tpu.pipeline_mode<synchronous>, transform_indices = @transform_1, window_bounds = array<i64: 16, 32>}, {pipeline_mode = #tpu.pipeline_mode<synchronous>, transform_indices = @transform_2, window_bounds = array<i64: 1, 32>}, {pipeline_mode = #tpu.pipeline_mode<synchronous>, transform_indices = @transform_3, window_bounds = array<i64: 32, 16>}, {pipeline_mode = #tpu.pipeline_mode<synchronous>, transform_indices = @transform_4, window_bounds = array<i64: 1, 16>}, {transform_indices = @transform_5, window_bounds = array<i64: 8, 16>}, {transform_indices = @transform_6, window_bounds = array<i64: 8, 32>}]} {
    %c0 = arith.constant 0 : index
    %c0_0 = arith.constant 0 : index
    %0 = vector.load %arg1[%c0, %c0_0] : memref<8x16xf32, #tpu.memory_space<vmem>>, vector<8x16xf32>
    %c0_1 = arith.constant 0 : index
    %c0_2 = arith.constant 0 : index
    %1 = vector.load %arg2[%c0_1, %c0_2] : memref<16x32xf32, #tpu.memory_space<vmem>>, vector<16x32xf32>
    %cst = arith.constant dense<0.000000e+00> : vector<8x32xf32>
    %2 = tpu.matmul %0, %1, %cst {dimension_numbers = #tpu.dot_dimension_numbers<[1], [0], [0], [1], [0, 0, 1, 1], [], []>} : vector<8x16xf32>, vector<16x32xf32>, vector<8x32xf32> -> vector<8x32xf32>
    %c0_3 = arith.constant 0 : index
    %c0_4 = arith.constant 0 : index
    %3 = vector.load %arg3[%c0_3, %c0_4] : memref<1x32xf32, #tpu.memory_space<vmem>>, vector<1x32xf32>
    %4 = vector.broadcast %3 : vector<1x32xf32> to vector<8x32xf32>
    %5 = arith.addf %2, %4 : vector<8x32xf32>
    %cst_5 = arith.constant 5.000000e-01 : f32
    %6 = vector.broadcast %cst_5 : f32 to vector<8x32xf32>
    %7 = arith.mulf %6, %5 : vector<8x32xf32>
    %8 = math.tanh %7 : vector<8x32xf32>
    %cst_6 = arith.constant 5.000000e-01 : f32
    %9 = vector.broadcast %cst_6 : f32 to vector<8x32xf32>
    %10 = arith.mulf %9, %8 : vector<8x32xf32>
    %cst_7 = arith.constant 5.000000e-01 : f32
    %11 = vector.broadcast %cst_7 : f32 to vector<8x32xf32>
    %12 = arith.addf %10, %11 : vector<8x32xf32>
    %c0_8 = arith.constant 0 : index
    %c0_9 = arith.constant 0 : index
    %13 = vector.load %arg7[%c0_8, %c0_9] : memref<8x32xf32, #tpu.memory_space<vmem>>, vector<8x32xf32>
    tpu.vector_store %arg7[%c0_8, %c0_9], %12 {strides = array<i32>} : memref<8x32xf32, #tpu.memory_space<vmem>>, vector<8x32xf32>,
    %c0_10 = arith.constant 0 : index
    %c0_11 = arith.constant 0 : index
    %14 = vector.load %arg4[%c0_10, %c0_11] : memref<32x16xf32, #tpu.memory_space<vmem>>, vector<32x16xf32>
    %cst_12 = arith.constant dense<0.000000e+00> : vector<8x16xf32>
    %15 = tpu.matmul %12, %14, %cst_12 {dimension_numbers = #tpu.dot_dimension_numbers<[1], [0], [0], [1], [0, 0, 1, 1], [], []>} : vector<8x32xf32>, vector<32x16xf32>, vector<8x16xf32> -> vector<8x16xf32>
    %c0_13 = arith.constant 0 : index
    %c0_14 = arith.constant 0 : index
    %16 = vector.load %arg5[%c0_13, %c0_14] : memref<1x16xf32, #tpu.memory_space<vmem>>, vector<1x16xf32>
    %17 = vector.broadcast %16 : vector<1x16xf32> to vector<8x16xf32>
    %18 = arith.addf %15, %17 : vector<8x16xf32>
    %cst_15 = arith.constant 5.000000e-01 : f32
    %19 = vector.broadcast %cst_15 : f32 to vector<8x16xf32>
    %20 = arith.mulf %19, %18 : vector<8x16xf32>
    %21 = math.tanh %20 : vector<8x16xf32>
    %cst_16 = arith.constant 5.000000e-01 : f32
    %22 = vector.broadcast %cst_16 : f32 to vector<8x16xf32>
    %23 = arith.mulf %22, %21 : vector<8x16xf32>
    %cst_17 = arith.constant 5.000000e-01 : f32
    %24 = vector.broadcast %cst_17 : f32 to vector<8x16xf32>
    %25 = arith.addf %23, %24 : vector<8x16xf32>
    %c0_18 = arith.constant 0 : index
    %c0_19 = arith.constant 0 : index
    %26 = vector.load %arg6[%c0_18, %c0_19] : memref<8x16xf32, #tpu.memory_space<vmem>>, vector<8x16xf32>
    tpu.vector_store %arg6[%c0_18, %c0_19], %25 {strides = array<i32>} : memref<8x16xf32, #tpu.memory_space<vmem>>, vector<8x16xf32>,
    return
  }
  func.func @transform_0(%arg0: i32) -> (i32, i32) {
    %c0_i32 = arith.constant 0 : i32
    %c0_i32_0 = arith.constant 0 : i32
    return %arg0, %c0_i32 : i32, i32
  }
  func.func @transform_1(%arg0: i32) -> (i32, i32) {
    %c0_i32 = arith.constant 0 : i32
    %c0_i32_0 = arith.constant 0 : i32
    %c0_i32_1 = arith.constant 0 : i32
    return %c0_i32, %c0_i32_0 : i32, i32
  }
  func.func @transform_2(%arg0: i32) -> (i32, i32) {
    %c0_i32 = arith.constant 0 : i32
    %c0_i32_0 = arith.constant 0 : i32
    %c0_i32_1 = arith.constant 0 : i32
    return %c0_i32, %c0_i32_0 : i32, i32
  }
  func.func @transform_3(%arg0: i32) -> (i32, i32) {
    %c0_i32 = arith.constant 0 : i32
    %c0_i32_0 = arith.constant 0 : i32
    %c0_i32_1 = arith.constant 0 : i32
    return %c0_i32, %c0_i32_0 : i32, i32
  }
  func.func @transform_4(%arg0: i32) -> (i32, i32) {
    %c0_i32 = arith.constant 0 : i32
    %c0_i32_0 = arith.constant 0 : i32
    %c0_i32_1 = arith.constant 0 : i32
    return %c0_i32, %c0_i32_0 : i32, i32
  }
  func.func @transform_5(%arg0: i32) -> (i32, i32) {
    %c0_i32 = arith.constant 0 : i32
    %c0_i32_0 = arith.constant 0 : i32
    return %arg0, %c0_i32 : i32, i32
  }
  func.func @transform_6(%arg0: i32) -> (i32, i32) {
    %c0_i32 = arith.constant 0 : i32
    %c0_i32_0 = arith.constant 0 : i32
    return %arg0, %c0_i32 : i32, i32
  }
}

</mosaic_0001>

<bundles_post_ra>
// kernel: tpu_custom_call.1
= control target key start
LH: loop header
LB: loop body
LE: loop exit
PB: predicated region body
PF: predicated region fallthrough
CT: control target
= control target key end

     0   :  { %s631_s21 = smov 0   ;;  %s682_s0 = inlined_call_operand.vmem [shape: f32[64,16], index: 0, kind: input, shape index: {}]   ;;  %s683_s1 = inlined_call_operand.vmem [shape: f32[16,32], index: 1, kind: input, shape index: {}]   ;;  %s684_s2 = inlined_call_operand.vmem [shape: f32[1,32], index: 2, kind: input, shape index: {}]   ;;  %s685_s3 = inlined_call_operand.vmem [shape: f32[32,16], index: 3, kind: input, shape index: {}]   ;;  %s686_s4 = inlined_call_operand.vmem [shape: f32[1,16], index: 4, kind: input, shape index: {}]   ;;  %s687_s5 = inlined_call_operand.vmem [shape: f32[64,16], index: 5, kind: output, shape index: {0}]   ;;  %s688_s6 = inlined_call_operand.vmem [shape: f32[64,32], index: 6, kind: output, shape index: {1}]  }
   0x1 LB: > { %s521_s22 = sadd.s32 4294967295, %s591_s21   ;;  %p525_p0 = scmp.ge.s32.totalorder %s591_s21, 1  ;;  %s591_s21 = sphi %s631_s21, %s17_s21  }
   0x2   : > { %p214_p1 = scmp.lt.s32.totalorder %s591_s21, 9 }
   0x4   : > { %p215_p2 = pnand %p525_p0, %p214_p1 }
   0x5   : > { %v259_v0 = vld [vmem:[%s683_s1] sm:$0xff] (!%p215_p2)  ;;  %v260_v1 = vld [vmem:[%s683_s1 + $0x8] sm:$0xff] (!%p215_p2)  ;;  %p246_p3 = scmp.lt.s32.totalorder (!%p215_p2), %s521_s22, 7  ;;  %v593_v2 = vmov (!%p215_p2), 0.0|0.0   ;;  %vm594_vm0 = vmmov (!%p215_p2), 0   ;;  %v595_v4 = vmov (!%p215_p2), 0.0  }
   0x6   : > { %218 = sbr.rel (%p215_p2) target bundleno = 480 (0x1e0), region = 40  ;;  %561 = vmatprep.subr.bf16.mxu0 (!%p215_p2), %v593_v2  ;;  %v562_v3 = vpack.c.bf16 (!%p215_p2), %v260_v1, %v259_v0  ;;  %547 = vmatprep.mubr.msk.f32.mxu0 (!%p215_p2), %vm594_vm0, %v595_v4  ;;  %vm268_vm1 = vcmask (!%p215_p2), 130048   ;;  %v348_v6 = vld [vmem:[%s685_s3] sm:$0xff] (!%p215_p2)  ;;  %v349_v7 = vld [vmem:[%s685_s3 + $0x8] sm:$0xff] (!%p215_p2)  ;;  %v350_v9 = vld [vmem:[%s685_s3 + $0x10] sm:$0xff] (!%p215_p2)  ;;  %vm346_vm2 = vcmask (!%p215_p2), 261120  }
   0x7   : > { %564 = vmatprep.subr.bf16.mxu1 (!%p215_p2), %v593_v2  ;;  %558 = vmatprep.mubr.msk.f32.mxu1 (!%p215_p2), %vm594_vm0, %v595_v4  ;;  %v565_v8 = vpack.c.bf16 (!%p215_p2), %v349_v7, %v348_v6  ;;  %v351_v10 = vld [vmem:[%s685_s3 + $0x18] sm:$0xff] (!%p215_p2)  ;;  %v529_v12 = vld [vmem:[%s684_s2] ss:$0 sm:$0xff] (!%p215_p2) }
   0x8   : > { %563 = vmatpush3.bf16.msra.mxu0 (!%p215_p2), %v562_v3  ;;  %v568_v11 = vpack.c.bf16 (!%p215_p2), %v351_v10, %v350_v9  ;;  %v531_v20 = vld [vmem:[%s686_s4] ss:$0 sm:$0xff] (!%p215_p2) }
   0x9   : > { %566 = vmatpush3.bf16.msra.mxu1 (!%p215_p2), %v565_v8 }
   0xa   : > { %567 = vmatprep.subr.bf16.mxu1 (!%p215_p2), %v593_v2 }
   0xd   : > { %s690_s22 = smov (!%p246_p3, %s521_s22), 7  ;;  %569 = vmatpush3.bf16.msra.mxu1 %v568_v11 }
   0xe   : > { %s645_s27 = sshll.u32 %s690_s22, 3 }
   0xf   : > { %s249_s30 = scalar_lea.vmem %s682_s0, %s645_s27  ;;  %s257_s19 = scalar_lea.vmem %s688_s6, %s645_s27 }
  0x10   : > { %v258_v5 = vld [vmem:[%s249_s30] sm:$0xff]  ;;  %s253_s25 = scalar_lea.vmem %s687_s5, %s645_s27 }
  0x11   : > { %548 = vmatmul.mubr.msk.f32.vlgmr.msra.gmra.mrb[0].mxu0 %vm268_vm1, %v258_v5 }
  0xe4   : > { %v338_v13 = vpop.f32.mrb[0].mxu0 }
  0xe5   : > { %v339_v14 = vadd.f32 %v529_v12, %v338_v13  ;;  %v549_v15 = vpop.f32.mrb[1].mxu0 }
  0xe7   : > { %v342_v16 = vmul.f32 0.5, %v339_v14 }
  0xe9   : > { %581 = vtanh.f32 %v342_v16 }
  0xf3   : > { %v582_v17 = vpop.eup %581 }
  0xf4   : > { %v344_v18 = vmul.f32 0.5, %v582_v17 }
  0xf6   : > { %v345_v19 = vadd.f32 0.5, %v344_v18 }
  0xf8   : > { %347 = vst.msk [vmem:[%s257_s19] sm:$0xff] %vm346_vm2, %v345_v19  ;;  %559 = vmatmul.mubr.msk.f32.vlgmr.msra.gmra.mrb[0].mxu1 %vm346_vm2, %v345_v19 }
 0x1cb   : > { %v428_v21 = vpop.f32.mrb[0].mxu1 }
 0x1cc   : > { %v429_v22 = vadd.f32 %v531_v20, %v428_v21  ;;  %v560_v23 = vpop.f32.mrb[1].mxu1 }
 0x1ce   : > { %v432_v24 = vmul.f32 0.5, %v429_v22 }
 0x1d0   : > { %583 = vtanh.f32 %v432_v24 }
 0x1da   : > { %v584_v25 = vpop.eup %583 }
 0x1db   : > { %v434_v26 = vmul.f32 0.5, %v584_v25 }
 0x1dd   : > { %v435_v27 = vadd.f32 0.5, %v434_v26 }
 0x1df   : > { %436 = vst.msk [vmem:[%s253_s25] sm:$0xff] %vm268_vm1, %v435_v27 }
 0x1e0 PF: > { %s17_s21 = sadd.s32 1, %s591_s21  }
 0x1e1   : > { %p14_p4 = scmp.ge.s32.totalorder %s17_s21, 10  }
 0x1e3   :  { %16 = sbr.rel (!%p14_p4) target bundleno = 1 (0x1), region = 82 }

// kernel: tpu_custom_call.1
= control target key start
LH: loop header
LB: loop body
LE: loop exit
PB: predicated region body
PF: predicated region fallthrough
CT: control target
= control target key end

     0   :  { %s631_s21 = smov 0   ;;  %s682_s0 = inlined_call_operand.vmem [shape: f32[64,16], index: 0, kind: input, shape index: {}]   ;;  %s683_s1 = inlined_call_operand.vmem [shape: f32[16,32], index: 1, kind: input, shape index: {}]   ;;  %s684_s2 = inlined_call_operand.vmem [shape: f32[1,32], index: 2, kind: input, shape index: {}]   ;;  %s685_s3 = inlined_call_operand.vmem [shape: f32[32,16], index: 3, kind: input, shape index: {}]   ;;  %s686_s4 = inlined_call_operand.vmem [shape: f32[1,16], index: 4, kind: input, shape index: {}]   ;;  %s687_s5 = inlined_call_operand.vmem [shape: f32[64,16], index: 5, kind: output, shape index: {0}]   ;;  %s688_s6 = inlined_call_operand.vmem [shape: f32[64,32], index: 6, kind: output, shape index: {1}]  }
   0x1 LB: > { %s521_s22 = sadd.s32 4294967295, %s591_s21   ;;  %p525_p0 = scmp.ge.s32.totalorder %s591_s21, 1  ;;  %s591_s21 = sphi %s631_s21, %s17_s21  }
   0x2   : > { %p214_p1 = scmp.lt.s32.totalorder %s591_s21, 9 }
   0x4   : > { %p215_p2 = pnand %p525_p0, %p214_p1 }
   0x5   : > { %v259_v0 = vld [vmem:[%s683_s1] sm:$0xff] (!%p215_p2)  ;;  %v260_v1 = vld [vmem:[%s683_s1 + $0x8] sm:$0xff] (!%p215_p2)  ;;  %p246_p3 = scmp.lt.s32.totalorder (!%p215_p2), %s521_s22, 7  ;;  %v593_v2 = vmov (!%p215_p2), 0.0|0.0   ;;  %vm594_vm0 = vmmov (!%p215_p2), 0   ;;  %v595_v4 = vmov (!%p215_p2), 0.0  }
   0x6   : > { %218 = sbr.rel (%p215_p2) target bundleno = 480 (0x1e0), region = 40  ;;  %561 = vmatprep.subr.bf16.mxu0 (!%p215_p2), %v593_v2  ;;  %v562_v3 = vpack.c.bf16 (!%p215_p2), %v260_v1, %v259_v0  ;;  %547 = vmatprep.mubr.msk.f32.mxu0 (!%p215_p2), %vm594_vm0, %v595_v4  ;;  %vm268_vm1 = vcmask (!%p215_p2), 130048   ;;  %v348_v6 = vld [vmem:[%s685_s3] sm:$0xff] (!%p215_p2)  ;;  %v349_v7 = vld [vmem:[%s685_s3 + $0x8] sm:$0xff] (!%p215_p2)  ;;  %v350_v9 = vld [vmem:[%s685_s3 + $0x10] sm:$0xff] (!%p215_p2)  ;;  %vm346_vm2 = vcmask (!%p215_p2), 261120  }
   0x7   : > { %564 = vmatprep.subr.bf16.mxu1 (!%p215_p2), %v593_v2  ;;  %558 = vmatprep.mubr.msk.f32.mxu1 (!%p215_p2), %vm594_vm0, %v595_v4  ;;  %v565_v8 = vpack.c.bf16 (!%p215_p2), %v349_v7, %v348_v6  ;;  %v351_v10 = vld [vmem:[%s685_s3 + $0x18] sm:$0xff] (!%p215_p2)  ;;  %v529_v12 = vld [vmem:[%s684_s2] ss:$0 sm:$0xff] (!%p215_p2) }
   0x8   : > { %563 = vmatpush3.bf16.msra.mxu0 (!%p215_p2), %v562_v3  ;;  %v568_v11 = vpack.c.bf16 (!%p215_p2), %v351_v10, %v350_v9  ;;  %v531_v20 = vld [vmem:[%s686_s4] ss:$0 sm:$0xff] (!%p215_p2) }
   0x9   : > { %566 = vmatpush3.bf16.msra.mxu1 (!%p215_p2), %v565_v8 }
   0xa   : > { %567 = vmatprep.subr.bf16.mxu1 (!%p215_p2), %v593_v2 }
   0xd   : > { %s690_s22 = smov (!%p246_p3, %s521_s22), 7  ;;  %569 = vmatpush3.bf16.msra.mxu1 %v568_v11 }
   0xe   : > { %s645_s27 = sshll.u32 %s690_s22, 3 }
   0xf   : > { %s249_s30 = scalar_lea.vmem %s682_s0, %s645_s27  ;;  %s257_s19 = scalar_lea.vmem %s688_s6, %s645_s27 }
  0x10   : > { %v258_v5 = vld [vmem:[%s249_s30] sm:$0xff]  ;;  %s253_s25 = scalar_lea.vmem %s687_s5, %s645_s27 }
  0x11   : > { %548 = vmatmul.mubr.msk.f32.vlgmr.msra.gmra.mrb[0].mxu0 %vm268_vm1, %v258_v5 }
  0xe4   : > { %v338_v13 = vpop.f32.mrb[0].mxu0 }
  0xe5   : > { %v339_v14 = vadd.f32 %v529_v12, %v338_v13  ;;  %v549_v15 = vpop.f32.mrb[1].mxu0 }
  0xe7   : > { %v342_v16 = vmul.f32 0.5, %v339_v14 }
  0xe9   : > { %581 = vtanh.f32 %v342_v16 }
  0xf3   : > { %v582_v17 = vpop.eup %581 }
  0xf4   : > { %v344_v18 = vmul.f32 0.5, %v582_v17 }
  0xf6   : > { %v345_v19 = vadd.f32 0.5, %v344_v18 }
  0xf8   : > { %347 = vst.msk [vmem:[%s257_s19] sm:$0xff] %vm346_vm2, %v345_v19  ;;  %559 = vmatmul.mubr.msk.f32.vlgmr.msra.gmra.mrb[0].mxu1 %vm346_vm2, %v345_v19 }
 0x1cb   : > { %v428_v21 = vpop.f32.mrb[0].mxu1 }
 0x1cc   : > { %v429_v22 = vadd.f32 %v531_v20, %v428_v21  ;;  %v560_v23 = vpop.f32.mrb[1].mxu1 }
 0x1ce   : > { %v432_v24 = vmul.f32 0.5, %v429_v22 }
 0x1d0   : > { %583 = vtanh.f32 %v432_v24 }
 0x1da   : > { %v584_v25 = vpop.eup %583 }
 0x1db   : > { %v434_v26 = vmul.f32 0.5, %v584_v25 }
 0x1dd   : > { %v435_v27 = vadd.f32 0.5, %v434_v26 }
 0x1df   : > { %436 = vst.msk [vmem:[%s253_s25] sm:$0xff] %vm268_vm1, %v435_v27 }
 0x1e0 PF: > { %s17_s21 = sadd.s32 1, %s591_s21  }
 0x1e1   : > { %p14_p4 = scmp.ge.s32.totalorder %s17_s21, 10  }
 0x1e3   :  { %16 = sbr.rel (!%p14_p4) target bundleno = 1 (0x1), region = 82 }

</bundles_post_ra>
